<compile_context>
chip_gen: v7x
topology: tpu7x:2x2x1
jax: 0.10.0
libtpu: 0.0.40
codegen_flags: <defaults>
</compile_context>

<pallas_src>
import functools

import jax
import jax.numpy as jnp
from jax import lax
from jax.experimental import pallas as pl
from jax.experimental.pallas import tpu as pltpu

_POINTS_PER_ROW = 128                   # one vreg-lane-width of points per row
_ROW_LANES = 3 * _POINTS_PER_ROW        # 384 lanes: 128 complete xyz triplets
_VMEM_LIMIT = 48 * 1024 * 1024          # explicit cap: fits v7x 64 MiB physical


# --------------------------------------------------------------------------
# Interleaved (natural) layout kernel: rows of xyzxyz... , 384 lanes per row.
# --------------------------------------------------------------------------
def _contract3_kernel(x_ref, o_ref, *, inv_radius, normalize, approx):
    x = x_ref[...].astype(jnp.float32)                       # (TR, 384)
    lanes = x.shape[-1]
    a = jnp.abs(x)
    # Forward 3-window max: w[j] = max(a[j], a[j+1], a[j+2]).  Lane rolls are
    # XLU work (separate issue slot).  Row width 384 holds exactly 128
    # triplets, so no triplet straddles a row and wrapped lanes of the rolls
    # are never selected by the phase masks below.
    r1 = pltpu.roll(a, lanes - 1, 1)                          # a[j+1]
    r2 = pltpu.roll(a, lanes - 2, 1)                          # a[j+2]
    w = jnp.maximum(jnp.maximum(a, r1), r2)
    phase = lax.broadcasted_iota(jnp.int32, (1, lanes), 1) % 3
    n = jnp.where(phase == 0, w,
                  jnp.where(phase == 1,
                            pltpu.roll(w, 1, 1),              # w[j-1]
                            pltpu.roll(w, 2, 1)))             # w[j-2]
    s = jnp.maximum(n * inv_radius, 1e-13)
    inv_s = pl.reciprocal(s, approx=approx)                   # EUP slot
    m = jnp.where(s <= 1.0, 1.0, (2.0 - inv_s) * inv_s)
    if normalize:
        m = m * inv_radius
    o_ref[...] = (x * m).astype(o_ref.dtype)                  # one broadcast mul


def _pick_tile_rows(rows: int, max_rows: int = 1024) -> int:
    """Multiple-of-8 row tile; big (up to 1.5 MiB f32/buffer) but >=2 steps."""
    if rows <= 16:
        return rows                       # full extent (legal: equals array dim)
    t = (pl.cdiv(rows, 4) // 8) * 8
    return max(8, min(t, max_rows))


def _contract3_call(x2d, inv_radius, normalize, approx, tile_rows=None):
    rows, lanes = x2d.shape
    if tile_rows is None:
        tile_rows = _pick_tile_rows(rows)
    kernel = functools.partial(_contract3_kernel, inv_radius=inv_radius,
                               normalize=normalize, approx=approx)
    size = rows * lanes
    cost = pl.CostEstimate(flops=12 * size, transcendentals=size,
                           bytes_accessed=2 * size * x2d.dtype.itemsize)
    return pl.pallas_call(
        kernel,
        out_shape=jax.ShapeDtypeStruct((rows, lanes), x2d.dtype),
        grid_spec=pltpu.PrefetchScalarGridSpec(
            num_scalar_prefetch=0,
            grid=(pl.cdiv(rows, tile_rows),),
            in_specs=[pl.BlockSpec((tile_rows, lanes), lambda i: (i, 0))],
            out_specs=pl.BlockSpec((tile_rows, lanes), lambda i: (i, 0)),
        ),
        compiler_params=pltpu.CompilerParams(
            dimension_semantics=("parallel",),
            vmem_limit_bytes=_VMEM_LIMIT),
        cost_estimate=cost,
    )(x2d)


# --------------------------------------------------------------------------
# Channel-major (C, N) fast path / generic-C fallback.
# --------------------------------------------------------------------------
def _contract_cn_kernel(x_ref, o_ref, *, inv_radius, normalize, approx):
    x = x_ref[...].astype(jnp.float32)                        # (C, TN)
    n = jnp.max(jnp.abs(x), axis=0, keepdims=True)            # (1, TN)
    s = jnp.maximum(n * inv_radius, 1e-13)
    inv_s = pl.reciprocal(s, approx=approx)                   # EUP slot
    m = jnp.where(s <= 1.0, 1.0, (2.0 - inv_s) * inv_s)       # (1, TN) row only
    if normalize:
        m = m * inv_radius
    o_ref[...] = (x * m).astype(o_ref.dtype)                  # one broadcast mul


def _pick_tile_n(n: int, max_tile: int = 65536) -> int:
    t = pl.cdiv(pl.cdiv(n, 4), 128) * 128
    t = max(128, min(t, max_tile))
    return min(t, pl.cdiv(n, 128) * 128)


def contract_regressor_cn(x_cn: jax.Array, radius: float = 1.0,
                          normalize: bool = False, approx: bool = True,
                          tile_n: int | None = None) -> jax.Array:
    """Channel-major entry point: x_cn is (C, N); no transposes, no padding."""
    C, N = x_cn.shape
    if tile_n is None:
        tile_n = _pick_tile_n(N)
    kernel = functools.partial(_contract_cn_kernel,
                               inv_radius=1.0 / float(radius),
                               normalize=bool(normalize), approx=bool(approx))
    size = C * N
    cost = pl.CostEstimate(flops=6 * size, transcendentals=N,
                           bytes_accessed=2 * size * x_cn.dtype.itemsize)
    return pl.pallas_call(
        kernel,
        out_shape=jax.ShapeDtypeStruct((C, N), x_cn.dtype),
        grid_spec=pltpu.PrefetchScalarGridSpec(
            num_scalar_prefetch=0,
            grid=(pl.cdiv(N, tile_n),),
            in_specs=[pl.BlockSpec((C, tile_n), lambda i: (0, i))],
            out_specs=pl.BlockSpec((C, tile_n), lambda i: (0, i)),
        ),
        compiler_params=pltpu.CompilerParams(
            dimension_semantics=("parallel",),
            vmem_limit_bytes=_VMEM_LIMIT),
        cost_estimate=cost,
    )(x_cn)


# --------------------------------------------------------------------------
# Public API: natural (..., C) layout.
# --------------------------------------------------------------------------
@functools.partial(jax.jit, static_argnames=("radius", "normalize", "approx"))
def contract_regressor(xyz: jax.Array, radius: float = 1.0,
                       normalize: bool = False, approx: bool = True) -> jax.Array:
    """Pallas implementation of ContractRegressor.forward (p = inf)."""
    # TODO(synk): only p = inf (the module default) is implemented; a finite-p
    # norm would swap the window-max for sum(|x|^p)^(1/p).
    orig_shape = xyz.shape
    C = orig_shape[-1]
    if C != 3:
        # Generic in_dim: channel-major kernel (pays two layout transposes).
        # TODO(synk): interleave-aware kernel for general C (lcm(C,128) rows).
        flat = xyz.reshape(-1, C)
        out_cn = contract_regressor_cn(flat.T, radius=radius,
                                       normalize=normalize, approx=approx)
        return out_cn.T.reshape(orig_shape)

    n_points = xyz.size // 3
    flat = xyz.reshape(-1)                              # contiguous -> free
    rows = pl.cdiv(n_points, _POINTS_PER_ROW)
    padded = rows * _ROW_LANES
    if padded != flat.size:                             # rare ragged tail
        flat = jnp.pad(flat, (0, padded - flat.size))
    x2d = flat.reshape(rows, _ROW_LANES)                # contiguous -> free
    out2d = _contract3_call(x2d, 1.0 / float(radius), bool(normalize),
                            bool(approx))
    out = out2d.reshape(-1)
    if padded != xyz.size:
        out = out[:xyz.size]
    return out.reshape(orig_shape)


# --------------------------------------------------------------------------
# Pure-JAX reference + demo.
# --------------------------------------------------------------------------
def _contract_reference(xyz, radius=1.0, normalize=False):
    n = jnp.max(jnp.abs(xyz), axis=-1, keepdims=True)
    s = jnp.maximum(n / radius, 1e-13)
    out = jnp.where(s <= 1.0, xyz, (2.0 - 1.0 / s) * xyz / s)
    if normalize:
        out = out / radius
    return out


if __name__ == "__main__":
    key = jax.random.PRNGKey(0)
    k1, k2, k3 = jax.random.split(key, 3)
    # Tolerances: pl.reciprocal(approx=True) only affects the contracted
    # (s > 1) branch; values are O(1), so 5e-3 is a comfortable bound.
    TOL = dict(atol=5e-3, rtol=5e-3)

    # Case 1: natural (batch, n_points, 3) layout, n_points % 128 == 0
    # (zero-copy interleaved path). Scale by 2 so many points contract.
    xyz = 2.0 * jax.random.normal(k1, (2, 128, 3), dtype=jnp.float32)
    out = jax.block_until_ready(contract_regressor(xyz, radius=1.0))
    ref = _contract_reference(xyz, radius=1.0)
    assert out.shape == xyz.shape and out.dtype == xyz.dtype
    assert jnp.allclose(out, ref, **TOL), "mismatch (aligned path)"

    # Case 2: ragged point count + normalize + non-unit radius (pad path).
    xyz2 = 3.0 * jax.random.normal(k2, (2, 100, 3), dtype=jnp.float32)
    out2 = jax.block_until_ready(
        contract_regressor(xyz2, radius=1.5, normalize=True))
    ref2 = _contract_reference(xyz2, radius=1.5, normalize=True)
    assert jnp.allclose(out2, ref2, **TOL), "mismatch (ragged/normalize path)"

    # Case 3: channel-major (C, N) fast path.
    x_cn = 2.0 * jax.random.normal(k3, (3, 256), dtype=jnp.float32)
    out3 = jax.block_until_ready(contract_regressor_cn(x_cn, radius=1.0))
    ref3 = _contract_reference(x_cn.T, radius=1.0).T
    assert jnp.allclose(out3, ref3, **TOL), "mismatch (channel-major path)"

    print("KERNEL_OK")
</pallas_src>

<mosaic_0001>
module attributes {stable_mosaic.version = 11 : i64} {
  func.func @_contract3_kernel(%arg0: i32, %arg1: memref<2x384xf32, #tpu.memory_space<vmem>>, %arg2: memref<2x384xf32, #tpu.memory_space<vmem>>) attributes {dimension_semantics = [#tpu.dimension_semantics<parallel>], iteration_bounds = array<i64: 1>, scalar_prefetch = 0 : i64, scratch_operands = 0 : i64, tpu.core_type = #tpu.core_type<tc>, window_params = [{transform_indices = @transform_0, window_bounds = array<i64: 2, 384>}, {transform_indices = @transform_1, window_bounds = array<i64: 2, 384>}]} {
    %c0 = arith.constant 0 : index
    %c0_0 = arith.constant 0 : index
    %0 = vector.load %arg1[%c0, %c0_0] : memref<2x384xf32, #tpu.memory_space<vmem>>, vector<2x384xf32>
    %1 = math.absf %0 : vector<2x384xf32>
    %c383_i32 = arith.constant 383 : i32
    %2 = tpu.dynamic_rotate %1 by %c383_i32 dim 1 : vector<2x384xf32>, i32 -> vector<2x384xf32>
    %c382_i32 = arith.constant 382 : i32
    %3 = tpu.dynamic_rotate %1 by %c382_i32 dim 1 : vector<2x384xf32>, i32 -> vector<2x384xf32>
    %4 = arith.maximumf %1, %2 : vector<2x384xf32>
    %5 = arith.maximumf %4, %3 : vector<2x384xf32>
    %6 = tpu.iota {dimensions = array<i32: 1>} : vector<1x384xi32>
    %c3_i32 = arith.constant 3 : i32
    %c0_i32 = arith.constant 0 : i32
    %7 = arith.cmpi eq, %c3_i32, %c0_i32 : i32
    %c1_i32 = arith.constant 1 : i32
    %8 = arith.select %7, %c1_i32, %c3_i32 : i32
    %9 = vector.broadcast %8 : i32 to vector<1x384xi32>
    %10 = arith.remsi %6, %9 : vector<1x384xi32>
    %c0_i32_1 = arith.constant 0 : i32
    %11 = vector.broadcast %c0_i32_1 : i32 to vector<1x384xi32>
    %12 = arith.cmpi ne, %10, %11 : vector<1x384xi32>
    %c0_i32_2 = arith.constant 0 : i32
    %13 = vector.broadcast %c0_i32_2 : i32 to vector<1x384xi32>
    %14 = arith.cmpi slt, %10, %13 : vector<1x384xi32>
    %c0_i32_3 = arith.constant 0 : i32
    %15 = arith.cmpi slt, %8, %c0_i32_3 : i32
    %16 = vector.broadcast %15 : i1 to vector<1x384xi1>
    %17 = vector.broadcast %16 : vector<1x384xi1> to vector<1x384xi1>
    %18 = arith.xori %14, %17 : vector<1x384xi1>
    %19 = arith.andi %18, %12 : vector<1x384xi1>
    %20 = vector.broadcast %8 : i32 to vector<1x384xi32>
    %21 = arith.addi %10, %20 : vector<1x384xi32>
    %22 = arith.select %19, %21, %10 : vector<1x384xi1>, vector<1x384xi32>
    %c0_i32_4 = arith.constant 0 : i32
    %23 = vector.broadcast %c0_i32_4 : i32 to vector<1x384xi32>
    %24 = arith.cmpi eq, %22, %23 : vector<1x384xi32>
    %c1_i32_5 = arith.constant 1 : i32
    %25 = vector.broadcast %c1_i32_5 : i32 to vector<1x384xi32>
    %26 = arith.cmpi eq, %22, %25 : vector<1x384xi32>
    %c1_i32_6 = arith.constant 1 : i32
    %27 = tpu.dynamic_rotate %5 by %c1_i32_6 dim 1 : vector<2x384xf32>, i32 -> vector<2x384xf32>
    %c2_i32 = arith.constant 2 : i32
    %28 = tpu.dynamic_rotate %5 by %c2_i32 dim 1 : vector<2x384xf32>, i32 -> vector<2x384xf32>
    %29 = vector.shape_cast %26 : vector<1x384xi1> to vector<1x384xi1>
    %30 = vector.broadcast %29 : vector<1x384xi1> to vector<2x384xi1>
    %31 = arith.select %30, %27, %28 : vector<2x384xi1>, vector<2x384xf32>
    %32 = vector.shape_cast %24 : vector<1x384xi1> to vector<1x384xi1>
    %33 = vector.broadcast %32 : vector<1x384xi1> to vector<2x384xi1>
    %34 = arith.select %33, %5, %31 : vector<2x384xi1>, vector<2x384xf32>
    %cst = arith.constant 1.000000e+00 : f32
    %35 = vector.broadcast %cst : f32 to vector<2x384xf32>
    %36 = arith.mulf %34, %35 : vector<2x384xf32>
    %cst_7 = arith.constant 9.99999982E-14 : f32
    %37 = vector.broadcast %cst_7 : f32 to vector<2x384xf32>
    %38 = arith.maximumf %36, %37 : vector<2x384xf32>
    %39 = tpu.reciprocal %38 {approx = true} : vector<2x384xf32> -> vector<2x384xf32>
    %cst_8 = arith.constant 1.000000e+00 : f32
    %40 = vector.broadcast %cst_8 : f32 to vector<2x384xf32>
    %41 = arith.cmpf ole, %38, %40 : vector<2x384xf32>
    %cst_9 = arith.constant 2.000000e+00 : f32
    %42 = vector.broadcast %cst_9 : f32 to vector<2x384xf32>
    %43 = arith.subf %42, %39 : vector<2x384xf32>
    %44 = arith.mulf %43, %39 : vector<2x384xf32>
    %cst_10 = arith.constant 1.000000e+00 : f32
    %45 = vector.broadcast %cst_10 : f32 to vector<2x384xf32>
    %46 = arith.select %41, %45, %44 : vector<2x384xi1>, vector<2x384xf32>
    %47 = arith.mulf %0, %46 : vector<2x384xf32>
    %c0_11 = arith.constant 0 : index
    %c0_12 = arith.constant 0 : index
    %48 = vector.load %arg2[%c0_11, %c0_12] : memref<2x384xf32, #tpu.memory_space<vmem>>, vector<2x384xf32>
    tpu.vector_store %arg2[%c0_11, %c0_12], %47 {strides = array<i32>} : memref<2x384xf32, #tpu.memory_space<vmem>>, vector<2x384xf32>,
    return
  }
  func.func @transform_0(%arg0: i32) -> (i32, i32) {
    %c0_i32 = arith.constant 0 : i32
    %c0_i32_0 = arith.constant 0 : i32
    return %arg0, %c0_i32 : i32, i32
  }
  func.func @transform_1(%arg0: i32) -> (i32, i32) {
    %c0_i32 = arith.constant 0 : i32
    %c0_i32_0 = arith.constant 0 : i32
    return %arg0, %c0_i32 : i32, i32
  }
}

</mosaic_0001>

<bundles_post_ra>
// kernel: contract_regressor.1
= control target key start
LH: loop header
LB: loop body
LE: loop exit
PB: predicated region body
PF: predicated region fallthrough
CT: control target
= control target key end

     0   :  { %v15_v0 = vlaneseq  ;;  %v269_v2 = vmov 1983009808   ;;  %s270_s8 = smov 127   ;;  %s272_s9 = smov 2   ;;  %s346_s0 = inlined_call_operand.vmem [shape: f32[2,384], index: 0, kind: input, shape index: {}]   ;;  %s347_s1 = inlined_call_operand.vmem [shape: f32[2,384], index: 1, kind: output, shape index: {}]  }
   0x1   :  { %v287_v1 = vld [vmem:[%s346_s0] sm:$0x3f]  ;;  %v13_v3 = vunpack.c.l.s4 %v269_v2  ;;  %s271_s0 = smov 126   ;;  %s273_s10 = smov 1  }
   0x2   :  { %v9_v4 = vand.u32 2147483647, %v287_v1  ;;  %v16_v5 = vshrl.u32 %v15_v0, 7  ;;  %v294_v12 = vand.u32 127, %v15_v0 }
   0x3   :  { %v14_v6 = vunpack.c.0.s8 %v13_v3 }
   0x4   :  { %v11_v7 = vcombine.high %v9_v4, %v9_v4  ;;  %vm38_vm0 = vcmp.lt.s32.totalorder %v294_v12, 127  ;;  %vm48_vm1 = vcmp.lt.s32.totalorder %v294_v12, 126  ;;  %v94_v39 = vadd.s32 128, %v294_v12 }
   0x5   :  { %v290_v8 = vsub.s32 %v14_v6, %v16_v5  ;;  %v95_v40 = vadd.s32 256, %v294_v12  ;;  %v321_v41 = vmul.u32.u64.low 2863311531, %v294_v12  ;;  %v322_v42 = vmul.u32.u64.high 2863311531, %v294_v12, %v321_v41 }
   0x6   :  { %v324_v43 = vmul.u32.u64.low 2863311531, %v94_v39  ;;  %v325_v44 = vmul.u32.u64.high 2863311531, %v94_v39, %v324_v43  ;;  %vm176_vm11 = vcmp.lt.s32.totalorder %v294_v12, 1  ;;  %vm186_vm12 = vcmp.lt.s32.totalorder %v294_v12, 2 }
   0x7   :  { %v18_v9 = vrot.slane %v9_v4, %v290_v8  ;;  %v25_v10 = vrot.slane %v11_v7, %v290_v8  ;;  %v327_v45 = vmul.u32.u64.low 2863311531, %v95_v40  ;;  %v328_v46 = vmul.u32.u64.high 2863311531, %v95_v40, %v327_v45 }
   0x8   :  { %v102_v47 = vshrl.u32 %v322_v42, 1  ;;  %v113_v48 = vshrl.u32 %v325_v44, 1 }
   0x9   :  { %30 = vrot.lane.b32.xlu0 %v18_v9, %s270_s8  ;;  %34 = vrot.lane.b32.xlu1 %v25_v10, %s270_s8  ;;  %v26_v11 = vcombine.high %v18_v9, %v18_v9  ;;  %v124_v49 = vshrl.u32 %v328_v46, 1 }
   0xa   :  { %v103_v50 = vmul.u32 3, %v102_v47  ;;  %v114_v51 = vmul.u32 3, %v113_v48 }
   0xb   :  { %v125_v52 = vmul.u32 3, %v124_v49 }
   0xc   :  { %v104_v53 = vsub.s32 %v294_v12, %v103_v50  ;;  %v115_v54 = vsub.s32 %v94_v39, %v114_v51 }
   0xd   :  { %32 = vrot.lane.b32.xlu0 %v26_v11, %s270_s8  ;;  %42 = vrot.lane.b32.xlu1 %v18_v9, %s271_s0  ;;  %v126_v55 = vsub.s32 %v95_v40, %v125_v52 }
   0xe   :  { %vm129_vm2 = vcmp.ne.s32.totalorder %v104_v53, 0  ;;  %vm132_vm3 = vcmp.lt.s32.totalorder %v104_v53, 0  ;;  %vm130_vm4 = vcmp.ne.s32.totalorder %v115_v54, 0  ;;  %vm133_vm5 = vcmp.lt.s32.totalorder %v115_v54, 0 }
   0xf   :  { %vm131_vm6 = vcmp.ne.s32.totalorder %v126_v55, 0  ;;  %vm134_vm7 = vcmp.lt.s32.totalorder %v126_v55, 0  ;;  %vm135_vm8 = vmand %vm132_vm3, %vm129_vm2  ;;  %v138_v58 = vadd.s32 3, %v104_v53  ;;  %v139_v59 = vadd.s32 3, %v115_v54 }
  0x10   :  { %vm136_vm9 = vmand %vm133_vm5, %vm130_vm4  ;;  %v140_v60 = vadd.s32 3, %v126_v55 }
  0x11   :  { %44 = vrot.lane.b32.xlu0 %v26_v11, %s271_s0  ;;  %46 = vrot.lane.b32.xlu1 %v25_v10, %s271_s0  ;;  %vm137_vm10 = vmand %vm134_vm7, %vm131_vm6  ;;  %v141_v63 = vsel %vm135_vm8, %v138_v58, %v104_v53  ;;  %v142_v0 = vsel %vm136_vm9, %v139_v59, %v115_v54 }
  0x12   :  { %v143_v2 = vsel %vm137_vm10, %v140_v60, %v126_v55  ;;  %vm144_vm13 = vcmp.eq.s32.totalorder %v141_v63, 0  ;;  %vm147_vm14 = vcmp.eq.s32.totalorder %v141_v63, 1  ;;  %vm148_vm15 = vcmp.eq.s32.totalorder %v142_v0, 1 }
  0x13   :  { %vm146_vm2 = vcmp.eq.s32.totalorder %v143_v2, 0 }
  0x7b   :  { %v31_v13 = vpop.permute.xlu0 %30  ;;  %v35_v14 = vpop.permute.xlu1 %34 }
  0x7c   :  { %v41_v17 = vsel %vm38_vm0, %v35_v14, %v31_v13 }
  0x7d   :  { %v69_v21 = vrot.slane %v41_v17, %v290_v8 }
  0x7f   :  { %v33_v15 = vpop.permute.xlu0 %32  ;;  %v43_v16 = vpop.permute.xlu1 %42 }
  0x80   :  { %v39_v18 = vsel %vm38_vm0, %v33_v15, %v35_v14  ;;  %v40_v19 = vsel %vm38_vm0, %v31_v13, %v33_v15  ;;  %vm149_vm0 = vcmp.eq.s32.totalorder %v143_v2, 1 }
  0x81   :  { %v55_v20 = vcombine.low %v40_v19, %v39_v18 }
  0x83   :  { %v62_v22 = vrot.slane %v55_v20, %v290_v8  ;;  %v45_v23 = vpop.permute.xlu0 %44  ;;  %v47_v24 = vpop.permute.xlu1 %46 }
  0x84   :  { %v50_v25 = vsel %vm48_vm1, %v43_v16, %v45_v23  ;;  %v49_v26 = vsel %vm48_vm1, %v45_v23, %v47_v24  ;;  %v51_v27 = vsel %vm48_vm1, %v47_v24, %v43_v16  ;;  %vm145_vm1 = vcmp.eq.s32.totalorder %v142_v0, 0 }
  0x85   :  { %v70_v28 = vcombine.low %v62_v22, %v69_v21  ;;  %v76_v29 = vcombine.low %v50_v25, %v49_v26  ;;  %v90_v31 = vrot.slane %v51_v27, %v290_v8 }
  0x87   :  { %v83_v30 = vrot.slane %v76_v29, %v290_v8  ;;  %v72_v32 = vmax.f32 %v9_v4, %v70_v28 }
  0x89   :  { %v91_v33 = vcombine.low %v83_v30, %v90_v31 }
  0x8b   :  { %v93_v34 = vmax.f32 %v72_v32, %v91_v33 }
  0x8d   :  { %v303_v35 = vrot.slane %v93_v34, %v290_v8  ;;  %v151_v36 = vcombine.high %v93_v34, %v93_v34 }
  0x8f   :  { %180 = vrot.lane.b32.xlu1 %v303_v35, %s272_s9  ;;  %170 = vrot.lane.b32.xlu0 %v303_v35, %s273_s10  ;;  %v309_v37 = vcombine.high %v303_v35, %v303_v35  ;;  %v312_v38 = vrot.slane %v151_v36, %v290_v8 }
  0x93   :  { %172 = vrot.lane.b32.xlu1 %v309_v37, %s273_s10  ;;  %174 = vrot.lane.b32.xlu0 %v312_v38, %s273_s10 }
  0x97   :  { %184 = vrot.lane.b32.xlu1 %v312_v38, %s272_s9  ;;  %182 = vrot.lane.b32.xlu0 %v309_v37, %s272_s9 }
 0x101   :  { %v181_v56 = vpop.permute.xlu1 %180  ;;  %v171_v57 = vpop.permute.xlu0 %170 }
 0x105   :  { %v173_v61 = vpop.permute.xlu1 %172  ;;  %v175_v62 = vpop.permute.xlu0 %174 }
 0x106   :  { %v178_v3 = vsel %vm176_vm11, %v171_v57, %v173_v61  ;;  %v177_v4 = vsel %vm176_vm11, %v173_v61, %v175_v62  ;;  %v179_v7 = vsel %vm176_vm11, %v175_v62, %v171_v57 }
 0x109   :  { %v185_v5 = vpop.permute.xlu1 %184  ;;  %v183_v6 = vpop.permute.xlu0 %182 }
 0x10a   :  { %v189_v9 = vsel %vm186_vm12, %v185_v5, %v181_v56  ;;  %v187_v10 = vsel %vm186_vm12, %v183_v6, %v185_v5  ;;  %v188_v11 = vsel %vm186_vm12, %v181_v56, %v183_v6 }
 0x10b   :  { %v196_v13 = vsel %vm147_vm14, %v179_v7, %v189_v9  ;;  %v197_v14 = vsel %vm148_vm15, %v178_v3, %v188_v11  ;;  %v198_v15 = vsel %vm149_vm0, %v177_v4, %v187_v10 }
 0x10c   :  { %v205_v12 = vsel %vm144_vm13, %v303_v35, %v196_v13  ;;  %v206_v16 = vsel %vm145_vm1, %v309_v37, %v197_v14  ;;  %v207_v17 = vsel %vm146_vm2, %v312_v38, %v198_v15 }
 0x10d   :  { %v208_v18 = vmax.f32 %v205_v12, 1e-13  ;;  %v209_v19 = vmax.f32 %v206_v16, 1e-13  ;;  %v210_v20 = vmax.f32 %v207_v17, 1e-13 }
 0x10f   :  { %263 = vrcp.f32 %v208_v18  ;;  %vm214_vm3 = vcmp.le.f32.partialorder %v208_v18, 1.0  ;;  %vm215_vm4 = vcmp.le.f32.partialorder %v209_v19, 1.0  ;;  %vm216_vm5 = vcmp.le.f32.partialorder %v210_v20, 1.0 }
 0x110   :  { %265 = vrcp.f32 %v209_v19 }
 0x111   :  { %267 = vrcp.f32 %v210_v20 }
 0x119   :  { %v264_v21 = vpop.eup %263 }
 0x11a   :  { %v266_v22 = vpop.eup %265  ;;  %v217_v23 = vsub.f32 2.0, %v264_v21 }
 0x11b   :  { %v268_v24 = vpop.eup %267  ;;  %v218_v25 = vsub.f32 2.0, %v266_v22 }
 0x11c   :  { %v220_v26 = vmul.f32 %v264_v21, %v217_v23  ;;  %v219_v27 = vsub.f32 2.0, %v268_v24 }
 0x11d   :  { %v221_v28 = vmul.f32 %v266_v22, %v218_v25 }
 0x11e   :  { %v223_v29 = vsel %vm214_vm3, 1.0, %v220_v26  ;;  %v222_v30 = vmul.f32 %v268_v24, %v219_v27 }
 0x11f   :  { %v224_v31 = vsel %vm215_vm4, 1.0, %v221_v28 }
 0x120   :  { %v225_v32 = vsel %vm216_vm5, 1.0, %v222_v30  ;;  %v229_v33 = vcombine.low %v223_v29, %v224_v31 }
 0x121   :  { %v243_v35 = vrot.slane %v225_v32, %v290_v8 }
 0x122   :  { %v236_v34 = vrot.slane %v229_v33, %v290_v8 }
 0x124   :  { %v244_v36 = vcombine.low %v236_v34, %v243_v35 }
 0x126   :  { %v246_v37 = vmul.f32 %v244_v36, %v287_v1 }
 0x128   :  { %247 = vst [vmem:[%s347_s1] sm:$0x3f] %v246_v37 }

</bundles_post_ra>
